<compile_context>
chip_gen: v7x
topology: tpu7x:2x2x1
jax: 0.10.0
libtpu: 0.0.40
codegen_flags: <defaults>
</compile_context>

<pallas_src>
import functools

import jax
import jax.numpy as jnp
from jax import lax
from jax.experimental import pallas as pl
from jax.experimental.pallas import tpu as pltpu

GN_EPS = 1e-5  # torch.nn.GroupNorm default eps


# --------------------------------------------------------------------------- #
# Kernel
# --------------------------------------------------------------------------- #
def sa_kernel(x_ref, coef_ref, out_ref, *, lane_aligned):
    """One grid step: both shuffle halves of CT channel rows x HW spatial cols.

    x_ref    : (1, 2, CT, HW)  activations (half P=0 and P=1 of this channel tile)
    coef_ref : (2, C/2, 3)     full per-channel gate coefficients [a, b, c]
    out_ref  : (1, CT, 2*HW)   if lane_aligned else (1, CT, 2, HW)
    """
    ct = x_ref.shape[2]
    hw = x_ref.shape[3]
    t = pl.program_id(1)

    start = t * ct
    if ct % 8 == 0:
        start = pl.multiple_of(start, 8)

    x = x_ref[0]                                   # (2, CT, HW), input dtype
    xf = x.astype(jnp.float32)
    coef = coef_ref[:, pl.ds(start, ct), :]        # (2, CT, 3) f32
    a = coef[:, :, 0:1]
    b_c = coef[:, :, 1:2]
    c_c = coef[:, :, 2:3]

    # Per-channel statistics over the full spatial extent (the spatial axis is
    # never tiled, so these are exact).  Two-pass variance: x is resident in
    # VMEM, the re-read is cheap, and there is no cancellation.
    inv_hw = 1.0 / hw
    mean = jnp.sum(xf, axis=-1, keepdims=True) * inv_hw
    centered = xf - mean
    var = jnp.sum(centered * centered, axis=-1, keepdims=True) * inv_hw
    inv_std = lax.rsqrt(var + GN_EPS)              # EUP

    # gate argument = a*(x - mean)*inv_std + b*mean + c  ==  scale*x + offset
    scale = a * inv_std                            # (2, CT, 1) f32
    offset = b_c * mean + c_c - scale * mean       # (2, CT, 1) f32

    if x.dtype == jnp.bfloat16:
        # bf16 elementwise gate (native on v6e/v7x VPU/EUP); stats stayed f32.
        g = x * jax.nn.sigmoid(x * scale.astype(x.dtype) + offset.astype(x.dtype))
    else:
        g = xf * jax.nn.sigmoid(xf * scale + offset)
    g = g.astype(out_ref.dtype)

    if lane_aligned:
        # (1, CT, 2*HW): both halves land on 128-aligned lane offsets -> dense stores.
        out_ref[0, :, 0:hw] = g[0]
        out_ref[0, :, hw:2 * hw] = g[1]
    else:
        # (1, CT, 2, HW): size-2 axis is the shuffle position.
        out_ref[0, :, 0, :] = g[0]
        out_ref[0, :, 1, :] = g[1]


# --------------------------------------------------------------------------- #
# Tiling helpers
# --------------------------------------------------------------------------- #
def _round_up(v, m):
    return -(-v // m) * m


def _vmem_budget_bytes():
    """Generation-aware VMEM budget (picker target) and scoped limit."""
    cap = 64 << 20  # conservative default (v7x physical)
    try:
        v = getattr(pltpu.get_tpu_info(), "vmem_capacity_bytes", None)
        if v:
            cap = int(v)
    except Exception:
        pass
    limit = max(32 << 20, min((cap * 3) // 4, 112 << 20))   # 96 MiB on 128-MiB chips, 48 MiB on v7x
    budget = (limit * 3) // 5                                # ~57 MiB / ~28 MiB picker target
    return budget, limit


def _working_set_bytes(ct, c_half, hw, itemsize, lane_aligned):
    """Honest per-step VMEM footprint: double-buffered blocks + f32 temporaries."""
    hw_pad = _round_up(hw, 128)
    ct_pad = _round_up(ct, 16)                     # worst-case sublane padding (16-bit dtypes)
    in_block = 2 * ct_pad * hw_pad * itemsize      # (1, 2, CT, HW)
    if lane_aligned:
        out_block = ct_pad * _round_up(2 * hw, 128) * itemsize
    else:
        # (CT, 2, HW) minor tile: the size-2 sublane axis pads to a full tile.
        out_block = ct * 8 * hw_pad * 4
    coef = 2 * _round_up(c_half, 8) * 128 * 4      # lane-padded, resident once (count 2 buffers)
    temps = 4 * 2 * ct_pad * hw_pad * 4            # in-kernel f32 intermediates
    return 2 * (in_block + out_block) + 2 * coef + temps


def _pick_channel_tile(c_half, hw, itemsize, lane_aligned, batch, budget):
    """Largest channel tile (multiple of 8, or c_half itself) fitting the budget.

    When the batch is odd, prefer an even number of channel tiles so the grid
    still splits across the two v7x TensorCores.
    """
    cands = sorted({d for d in range(8, c_half + 1, 8) if c_half % d == 0} | {c_half},
                   reverse=True)
    fitting = [d for d in cands
               if _working_set_bytes(d, c_half, hw, itemsize, lane_aligned) <= budget]
    if not fitting:
        # TODO(synk): very large C*HW slabs would need spatial tiling with
        # partial-statistic accumulation; fall back to the smallest channel tile.
        return cands[-1]
    if batch % 2 == 1:
        even = [d for d in fitting if (c_half // d) % 2 == 0]
        if even:
            return even[0]
    return fitting[0]


# --------------------------------------------------------------------------- #
# Wrapper
# --------------------------------------------------------------------------- #
@functools.partial(jax.jit, static_argnames=("groups",))
def sa_layer_forward(x, params, *, groups):
    """Pallas implementation of sa_layer.forward.

    x: (b, c, h, w) float, c divisible by 2*groups.
    params: (c // (2*groups), 6) columns =
            [cweight, cbias, sweight, sbias, gn_weight, gn_bias]
    """
    b, c, h, w = x.shape
    cpg = c // groups            # channels per group
    half = cpg // 2
    hw = h * w
    c_half = c // 2
    itemsize = x.dtype.itemsize

    # ---- per-channel gate coefficients (tiny, plain JAX) ----
    cw, cb, sw, sb, gw, gb = (params[:, i].astype(jnp.float32) for i in range(6))
    zeros = jnp.zeros((half,), jnp.float32)
    coef_group = jnp.stack(
        [jnp.concatenate([zeros, sw * gw]),        # a
         jnp.concatenate([cw, zeros]),             # b
         jnp.concatenate([cb, sw * gb + sb])],     # c
        axis=1)                                    # (cpg, 3)
    coef = jnp.tile(coef_group, (groups, 1)).reshape(2, c_half, 3)  # [P, Q] -> channel P*c_half+Q

    xr = x.reshape(b, 2, c_half, hw)               # free contiguous view; no HBM pass

    lane_aligned = (hw % 128 == 0)
    budget, vmem_limit = _vmem_budget_bytes()
    ct = _pick_channel_tile(c_half, hw, itemsize, lane_aligned, b, budget)
    n_t = c_half // ct

    if lane_aligned:
        out_shape = jax.ShapeDtypeStruct((b, c_half, 2 * hw), x.dtype)
        out_spec = pl.BlockSpec((1, ct, 2 * hw), lambda bi, t: (bi, t, 0))
    else:
        out_shape = jax.ShapeDtypeStruct((b, c_half, 2, hw), x.dtype)
        out_spec = pl.BlockSpec((1, ct, 2, hw), lambda bi, t: (bi, t, 0, 0))

    # TODO(synk): for very small per-step blocks, pipeline_mode=pl.Buffered(3)
    # on the data specs could hide DMA issue latency; left at the default depth.
    cost = pl.CostEstimate(
        flops=int(10 * b * c * hw),
        transcendentals=int(b * c * hw),
        bytes_accessed=int(2 * b * c * hw * itemsize))

    out = pl.pallas_call(
        functools.partial(sa_kernel, lane_aligned=lane_aligned),
        out_shape=out_shape,
        grid_spec=pltpu.PrefetchScalarGridSpec(
            num_scalar_prefetch=0,
            grid=(b, n_t),
            in_specs=[
                pl.BlockSpec((1, 2, ct, hw), lambda bi, t: (bi, 0, t, 0)),
                # Full coefficient table, constant block index -> DMA'd once.
                pl.BlockSpec((2, c_half, 3), lambda bi, t: (0, 0, 0)),
            ],
            out_specs=out_spec),
        compiler_params=pltpu.CompilerParams(
            dimension_semantics=("parallel", "parallel"),
            vmem_limit_bytes=vmem_limit),
        cost_estimate=cost,
    )(xr, coef)

    # (b, C/2, 2, hw) or (b, C/2, 2*hw) -> (b, C, h, w): contiguous reshape
    # realizes channel_shuffle(., 2) exactly.
    return out.reshape(b, c, h, w)


# --------------------------------------------------------------------------- #
# Pure-JAX reference (mirrors the PyTorch forward exactly, computed in f32)
# --------------------------------------------------------------------------- #
def _channel_shuffle(x, groups):
    b, c, h, w = x.shape
    x = x.reshape(b, groups, c // groups, h, w)
    x = jnp.transpose(x, (0, 2, 1, 3, 4))
    return x.reshape(b, c, h, w)


def sa_layer_ref(x, params, *, groups):
    x = x.astype(jnp.float32)
    params = params.astype(jnp.float32)
    b, c, h, w = x.shape
    half = c // (2 * groups)
    cw = params[:, 0].reshape(1, half, 1, 1)
    cb = params[:, 1].reshape(1, half, 1, 1)
    sw = params[:, 2].reshape(1, half, 1, 1)
    sb = params[:, 3].reshape(1, half, 1, 1)
    gw = params[:, 4].reshape(1, half, 1, 1)
    gb = params[:, 5].reshape(1, half, 1, 1)

    xg = x.reshape(b * groups, -1, h, w)
    x0, x1 = xg[:, :half], xg[:, half:]

    xn = jnp.mean(x0, axis=(2, 3), keepdims=True)
    xn = cw * xn + cb
    xn = x0 * jax.nn.sigmoid(xn)

    mean = jnp.mean(x1, axis=(2, 3), keepdims=True)
    var = jnp.mean((x1 - mean) ** 2, axis=(2, 3), keepdims=True)
    xs = (x1 - mean) / jnp.sqrt(var + GN_EPS)
    xs = xs * gw + gb
    xs = sw * xs + sb
    xs = x1 * jax.nn.sigmoid(xs)

    out = jnp.concatenate([xn, xs], axis=1)
    out = out.reshape(b, -1, h, w)
    return _channel_shuffle(out, 2)


# --------------------------------------------------------------------------- #
# Self-test
# --------------------------------------------------------------------------- #
if __name__ == "__main__":
    base_key = jax.random.PRNGKey(0)

    def run_case(case, b, c, h, w, groups, dtype=jnp.float32, atol=2e-5, rtol=5e-5):
        half = c // (2 * groups)
        key = jax.random.fold_in(base_key, case)
        kx, kp = jax.random.split(key)
        x = jax.random.normal(kx, (b, c, h, w), dtype=jnp.float32)

        # Module __init__ uses cweight=sweight=0, cbias=sbias=1, gn.w=1, gn.b=0.
        # Use non-trivial values so every term of the kernel is exercised.
        pvals = 0.1 * jax.random.normal(kp, (half, 6), dtype=jnp.float32)
        params = pvals.at[:, 1].add(1.0)   # cbias ~ 1
        params = params.at[:, 3].add(1.0)  # sbias ~ 1
        params = params.at[:, 4].add(1.0)  # gn weight ~ 1

        x = x.astype(dtype)
        out = jax.block_until_ready(sa_layer_forward(x, params, groups=groups))
        ref = sa_layer_ref(x, params, groups=groups)
        assert out.shape == (b, c, h, w)
        out32 = out.astype(jnp.float32)
        err = float(jnp.max(jnp.abs(out32 - ref)))
        assert jnp.allclose(out32, ref, rtol=rtol, atol=atol), (
            f"mismatch vs reference (case {case}): max abs err {err}")

    # Small shapes consistent with the module (channels divisible by 2*groups).
    run_case(0, b=2, c=32, h=16, w=16, groups=4)     # hw % 128 == 0: lane-dense path
    run_case(1, b=1, c=48, h=16, w=16, groups=3)     # odd groups: shuffle boundary mid-group
    run_case(2, b=2, c=32, h=7,  w=7,  groups=4)     # hw = 49: fused-shuffle 4-D output path
    run_case(3, b=1, c=64, h=14, w=14, groups=8,     # bf16 gate math + multi-tile channel grid
             dtype=jnp.bfloat16, atol=5e-2, rtol=5e-2)
    print("KERNEL_OK")
</pallas_src>

<mosaic_0001>
module attributes {stable_mosaic.version = 11 : i64} {
  func.func @sa_kernel(%arg0: i32, %arg1: i32, %arg2: memref<1x2x16x256xf32, #tpu.memory_space<vmem>>, %arg3: memref<2x16x3xf32, #tpu.memory_space<vmem>>, %arg4: memref<1x16x512xf32, #tpu.memory_space<vmem>>) attributes {dimension_semantics = [#tpu.dimension_semantics<parallel>, #tpu.dimension_semantics<parallel>], iteration_bounds = array<i64: 2, 1>, scalar_prefetch = 0 : i64, scratch_operands = 0 : i64, tpu.core_type = #tpu.core_type<tc>, window_params = [{transform_indices = @transform_0, window_bounds = array<i64: 1, 2, 16, 256>}, {pipeline_mode = #tpu.pipeline_mode<synchronous>, transform_indices = @transform_1, window_bounds = array<i64: 2, 16, 3>}, {transform_indices = @transform_2, window_bounds = array<i64: 1, 16, 512>}]} {
    %c16_i32 = arith.constant 16 : i32
    %0 = arith.muli %arg1, %c16_i32 : i32
    %1 = tpu.assume_multiple %0, 8 : i32
    %c0 = arith.constant 0 : index
    %c0_0 = arith.constant 0 : index
    %c0_1 = arith.constant 0 : index
    %c0_2 = arith.constant 0 : index
    %2 = vector.load %arg2[%c0, %c0_0, %c0_1, %c0_2] : memref<1x2x16x256xf32, #tpu.memory_space<vmem>>, vector<1x2x16x256xf32>
    %3 = vector.shape_cast %2 : vector<1x2x16x256xf32> to vector<2x16x256xf32>
    %c0_3 = arith.constant 0 : index
    %4 = arith.index_cast %1 : i32 to index
    %c0_4 = arith.constant 0 : index
    %5 = vector.load %arg3[%c0_3, %4, %c0_4] : memref<2x16x3xf32, #tpu.memory_space<vmem>>, vector<2x16x3xf32>
    %6 = vector.extract_strided_slice %5 {offsets = [0, 0, 0], sizes = [2, 16, 1], strides = [1, 1, 1]} : vector<2x16x3xf32> to vector<2x16x1xf32>
    %7 = vector.extract_strided_slice %5 {offsets = [0, 0, 1], sizes = [2, 16, 1], strides = [1, 1, 1]} : vector<2x16x3xf32> to vector<2x16x1xf32>
    %8 = vector.extract_strided_slice %5 {offsets = [0, 0, 2], sizes = [2, 16, 1], strides = [1, 1, 1]} : vector<2x16x3xf32> to vector<2x16x1xf32>
    %cst = arith.constant dense<0.000000e+00> : vector<2x16xf32>
    %9 = vector.multi_reduction <add>, %3, %cst [2] : vector<2x16x256xf32> to vector<2x16xf32>
    %10 = vector.shape_cast %9 : vector<2x16xf32> to vector<2x16x1xf32>
    %cst_5 = arith.constant 3.906250e-03 : f32
    %11 = vector.broadcast %cst_5 : f32 to vector<2x16x1xf32>
    %12 = arith.mulf %10, %11 : vector<2x16x1xf32>
    %13 = vector.broadcast %12 : vector<2x16x1xf32> to vector<2x16x256xf32>
    %14 = arith.subf %3, %13 : vector<2x16x256xf32>
    %15 = arith.mulf %14, %14 : vector<2x16x256xf32>
    %cst_6 = arith.constant dense<0.000000e+00> : vector<2x16xf32>
    %16 = vector.multi_reduction <add>, %15, %cst_6 [2] : vector<2x16x256xf32> to vector<2x16xf32>
    %17 = vector.shape_cast %16 : vector<2x16xf32> to vector<2x16x1xf32>
    %cst_7 = arith.constant 3.906250e-03 : f32
    %18 = vector.broadcast %cst_7 : f32 to vector<2x16x1xf32>
    %19 = arith.mulf %17, %18 : vector<2x16x1xf32>
    %cst_8 = arith.constant 9.99999974E-6 : f32
    %20 = vector.broadcast %cst_8 : f32 to vector<2x16x1xf32>
    %21 = arith.addf %19, %20 : vector<2x16x1xf32>
    %22 = math.rsqrt %21 : vector<2x16x1xf32>
    %23 = arith.mulf %6, %22 : vector<2x16x1xf32>
    %24 = arith.mulf %7, %12 : vector<2x16x1xf32>
    %25 = arith.addf %24, %8 : vector<2x16x1xf32>
    %26 = arith.mulf %23, %12 : vector<2x16x1xf32>
    %27 = arith.subf %25, %26 : vector<2x16x1xf32>
    %28 = vector.broadcast %23 : vector<2x16x1xf32> to vector<2x16x256xf32>
    %29 = arith.mulf %3, %28 : vector<2x16x256xf32>
    %30 = vector.broadcast %27 : vector<2x16x1xf32> to vector<2x16x256xf32>
    %31 = arith.addf %29, %30 : vector<2x16x256xf32>
    %32 = arith.negf %31 : vector<2x16x256xf32>
    %33 = math.exp %32 : vector<2x16x256xf32>
    %cst_9 = arith.constant 1.000000e+00 : f32
    %34 = vector.broadcast %cst_9 : f32 to vector<2x16x256xf32>
    %35 = arith.addf %34, %33 : vector<2x16x256xf32>
    %36 = arith.divf %34, %35 : vector<2x16x256xf32>
    %37 = arith.mulf %3, %36 : vector<2x16x256xf32>
    %38 = vector.extract_strided_slice %37 {offsets = [0, 0, 0], sizes = [1, 16, 256], strides = [1, 1, 1]} : vector<2x16x256xf32> to vector<1x16x256xf32>
    %39 = vector.shape_cast %38 : vector<1x16x256xf32> to vector<16x256xf32>
    %c0_10 = arith.constant 0 : index
    %c0_11 = arith.constant 0 : index
    %c0_12 = arith.constant 0 : index
    %40 = vector.load %arg4[%c0_10, %c0_11, %c0_12] : memref<1x16x512xf32, #tpu.memory_space<vmem>>, vector<1x16x256xf32>
    %41 = vector.shape_cast %40 : vector<1x16x256xf32> to vector<16x256xf32>
    %42 = vector.shape_cast %39 : vector<16x256xf32> to vector<1x16x256xf32>
    tpu.vector_store %arg4[%c0_10, %c0_11, %c0_12], %42 {strides = array<i32>} : memref<1x16x512xf32, #tpu.memory_space<vmem>>, vector<1x16x256xf32>,
    %43 = vector.extract_strided_slice %37 {offsets = [1, 0, 0], sizes = [1, 16, 256], strides = [1, 1, 1]} : vector<2x16x256xf32> to vector<1x16x256xf32>
    %44 = vector.shape_cast %43 : vector<1x16x256xf32> to vector<16x256xf32>
    %c0_13 = arith.constant 0 : index
    %c0_14 = arith.constant 0 : index
    %c256 = arith.constant 256 : index
    %45 = vector.load %arg4[%c0_13, %c0_14, %c256] : memref<1x16x512xf32, #tpu.memory_space<vmem>>, vector<1x16x256xf32>
    %46 = vector.shape_cast %45 : vector<1x16x256xf32> to vector<16x256xf32>
    %47 = vector.shape_cast %44 : vector<16x256xf32> to vector<1x16x256xf32>
    tpu.vector_store %arg4[%c0_13, %c0_14, %c256], %47 {strides = array<i32>} : memref<1x16x512xf32, #tpu.memory_space<vmem>>, vector<1x16x256xf32>,
    return
  }
  func.func @transform_0(%arg0: i32, %arg1: i32) -> (i32, i32, i32, i32) {
    %c0_i32 = arith.constant 0 : i32
    %c0_i32_0 = arith.constant 0 : i32
    %c0_i32_1 = arith.constant 0 : i32
    return %arg0, %c0_i32, %arg1, %c0_i32_0 : i32, i32, i32, i32
  }
  func.func @transform_1(%arg0: i32, %arg1: i32) -> (i32, i32, i32) {
    %c0_i32 = arith.constant 0 : i32
    %c0_i32_0 = arith.constant 0 : i32
    %c0_i32_1 = arith.constant 0 : i32
    %c0_i32_2 = arith.constant 0 : i32
    return %c0_i32, %c0_i32_0, %c0_i32_1 : i32, i32, i32
  }
  func.func @transform_2(%arg0: i32, %arg1: i32) -> (i32, i32, i32) {
    %c0_i32 = arith.constant 0 : i32
    %c0_i32_0 = arith.constant 0 : i32
    return %arg0, %arg1, %c0_i32 : i32, i32, i32
  }
}

</mosaic_0001>

<bundles_post_ra>
// kernel: sa_layer_forward.1
= control target key start
LH: loop header
LB: loop body
LE: loop exit
PB: predicated region body
PF: predicated region fallthrough
CT: control target
= control target key end

     0   :  { %s664_s9 = smov 0   ;;  %s666_s10 = smov 0   ;;  %s788_s0 = inlined_call_operand.vmem [shape: f32[2,2,16,256], index: 0, kind: input, shape index: {}]   ;;  %s789_s1 = inlined_call_operand.vmem [shape: f32[2,16,3], index: 1, kind: input, shape index: {}]   ;;  %s790_s2 = inlined_call_operand.vmem [shape: f32[2,16,512], index: 2, kind: output, shape index: {}]  }
   0x1   :  { %s668_s11 = smov 0  }
   0x2 LB: > { %s24_s12 = sadd.s32 1, %s639_s10  ;;  %p532_p0 = scmp.ge.s32.totalorder %s643_s11, 1  ;;  %s643_s11 = sphi %s668_s11, %s12_s11   ;;  %s639_s10 = sphi %s666_s10, %s792_s10   ;;  %s635_s9 = sphi %s664_s9, %s791_s9  }
   0x3   : > { %p26_p1 = scmp.ge.s32.totalorder %s24_s12, 2  ;;  %p134_p2 = scmp.lt.s32.totalorder %s643_s11, 3 }
   0x5   : > { %s794_s12 = smov (%p26_p1, %s24_s12), 0  ;;  %p135_p3 = pnand %p532_p0, %p134_p2 }
   0x6   : > { %p167_p4 = scmp.lt.s32.totalorder (!%p135_p3), %s635_s9, 1  ;;  %v199_v40 = vld [vmem:[%s789_s1 + $0x8] sm:$0xff] (!%p135_p3)  ;;  %v198_v41 = vld [vmem:[%s789_s1] sm:$0xff] (!%p135_p3)  ;;  %s645_s21 = smov (!%p135_p3), 127   ;;  %v200_v42 = vld [vmem:[%s789_s1 + $0x10] sm:$0xff] (!%p135_p3)  ;;  %v646_v44 = vmov (!%p135_p3), 0  }
   0x7   : > { %138 = sbr.rel (%p135_p3) target bundleno = 617 (0x269), region = 28  ;;  %v201_v43 = vld [vmem:[%s789_s1 + $0x18] sm:$0xff] (!%p135_p3)  ;;  %577 = vset.pattern.permute.xlu0 (!%p135_p3), %v646_v44  ;;  %578 = vset.pattern.permute.xlu1 (!%p135_p3), %v646_v44  ;;  %s647_s26 = smov (!%p135_p3), 1  }
   0xe   : > { %s796_s9 = smov (!%p167_p4, %s635_s9), 1 }
   0xf   : > { %s547_s13 = sshll.u32 %s796_s9, 6 }
  0x10   : > { %s175_s16 = scalar_lea.vmem %s788_s0, %s547_s13  ;;  %s186_s29 = scalar_lea.vmem %s790_s2, %s547_s13 }
  0x11   : > { %v690_v0 = vld [vmem:[%s175_s16] sm:$0xff]  ;;  %v692_v1 = vld [vmem:[%s175_s16 + $0x8] sm:$0xff]  ;;  %v700_v5 = vld [vmem:[%s175_s16 + $0x10] sm:$0xff] }
  0x12   : > { %v694_v2 = vld [vmem:[%s175_s16 + $0x20] sm:$0xff]  ;;  %v202_v3 = vadd.f32 %v692_v1, %v690_v0  ;;  %v698_v4 = vld [vmem:[%s175_s16 + $0x28] sm:$0xff]  ;;  %v702_v6 = vld [vmem:[%s175_s16 + $0x18] sm:$0xff] }
  0x13   : > { %v208_v7 = vadd.f32 %v698_v4, %v694_v2  ;;  %v706_v8 = vld [vmem:[%s175_s16 + $0x30] sm:$0xff]  ;;  %v708_v9 = vld [vmem:[%s175_s16 + $0x38] sm:$0xff]  ;;  %v205_v10 = vadd.f32 %v702_v6, %v700_v5 }
  0x14   : > { %203 = vadd.xlane.f32.xlu0 %v202_v3  ;;  %v211_v11 = vadd.f32 %v708_v9, %v706_v8 }
  0x15   : > { %209 = vadd.xlane.f32.xlu1 %v208_v7 }
  0x18   : > { %206 = vadd.xlane.f32.xlu0 %v205_v10 }
  0x19   : > { %212 = vadd.xlane.f32.xlu1 %v211_v11 }
  0xa1   : > { %v204_v12 = vpop.xlane.xlu0 %203 }
  0xa2   : > { %v714_v13 = vmul.f32 0.00390625, %v204_v12  ;;  %v210_v14 = vpop.xlane.xlu1 %209 }
  0xa3   : > { %v716_v15 = vmul.f32 0.00390625, %v210_v14  ;;  %v648_v14 = vmov 1  }
  0xa4   : > { %v218_v16 = vsub.f32 %v690_v0, %v714_v13  ;;  %v219_v17 = vsub.f32 %v692_v1, %v714_v13 }
  0xa5   : > { %v207_v18 = vpop.xlane.xlu0 %206  ;;  %v222_v19 = vsub.f32 %v694_v2, %v716_v15  ;;  %v223_v20 = vsub.f32 %v698_v4, %v716_v15 }
  0xa6   : > { %v726_v21 = vmul.f32 0.00390625, %v207_v18  ;;  %v213_v22 = vpop.xlane.xlu1 %212  ;;  %v226_v23 = vmul.f32 %v218_v16, %v218_v16  ;;  %v227_v24 = vmul.f32 %v219_v17, %v219_v17 }
  0xa7   : > { %v728_v25 = vmul.f32 0.00390625, %v213_v22  ;;  %v230_v26 = vmul.f32 %v222_v19, %v222_v19  ;;  %v231_v27 = vmul.f32 %v223_v20, %v223_v20  ;;  %v262_v19 = vmul.f32 %v714_v13, %v198_v41 }
  0xa8   : > { %v234_v28 = vadd.f32 %v227_v24, %v226_v23  ;;  %v220_v29 = vsub.f32 %v700_v5, %v726_v21  ;;  %v221_v30 = vsub.f32 %v702_v6, %v726_v21  ;;  %v263_v24 = vmul.f32 %v726_v21, %v199_v40 }
  0xa9   : > { %v224_v31 = vsub.f32 %v706_v8, %v728_v25  ;;  %v225_v32 = vsub.f32 %v708_v9, %v728_v25  ;;  %v240_v33 = vadd.f32 %v231_v27, %v230_v26  ;;  %v264_v27 = vmul.f32 %v716_v15, %v200_v42 }
  0xaa   : > { %235 = vadd.xlane.f32.xlu0 %v234_v28  ;;  %v228_v34 = vmul.f32 %v220_v29, %v220_v29  ;;  %v229_v35 = vmul.f32 %v221_v30, %v221_v30 }
  0xab   : > { %v232_v36 = vmul.f32 %v224_v31, %v224_v31  ;;  %v233_v37 = vmul.f32 %v225_v32, %v225_v32  ;;  %v265_v31 = vmul.f32 %v728_v25, %v201_v43 }
  0xac   : > { %v237_v38 = vadd.f32 %v229_v35, %v228_v34 }
  0xad   : > { %v243_v39 = vadd.f32 %v233_v37, %v232_v36 }
  0xae   : > { %241 = vadd.xlane.f32.xlu0 %v240_v33  ;;  %238 = vadd.xlane.f32.xlu1 %v237_v38 }
  0xb2   : > { %244 = vadd.xlane.f32.xlu1 %v243_v39 }
  0xc3   : > { %272 = vrot.lane.b32.xlu1 %v199_v40, %s645_s21 }
  0xc4   : > { %270 = vrot.lane.b32.xlu0 %v198_v41, %s645_s21 }
  0xc7   : > { %274 = vrot.lane.b32.xlu1 %v200_v42, %s645_s21 }
  0xcb   : > { %276 = vrot.lane.b32.xlu1 %v201_v43, %s645_s21 }
 0x137   : > { %v236_v45 = vpop.xlane.xlu0 %235 }
 0x138   : > { %v246_v46 = vmul.f32 0.00390625, %v236_v45 }
 0x13a   : > { %v250_v47 = vadd.f32 1e-05, %v246_v46 }
 0x13b   : > { %v239_v48 = vpop.xlane.xlu1 %238  ;;  %v242_v49 = vpop.xlane.xlu0 %241 }
 0x13c   : > { %581 = vrsqrt.f32 %v250_v47  ;;  %v247_v50 = vmul.f32 0.00390625, %v239_v48  ;;  %v248_v51 = vmul.f32 0.00390625, %v242_v49 }
 0x13e   : > { %v251_v52 = vadd.f32 1e-05, %v247_v50  ;;  %v252_v53 = vadd.f32 1e-05, %v248_v51 }
 0x13f   : > { %v245_v54 = vpop.xlane.xlu1 %244  ;;  %v271_v18 = vpop.permute.xlu0 %270 }
 0x140   : > { %583 = vrsqrt.f32 %v251_v52  ;;  %v249_v55 = vmul.f32 0.00390625, %v245_v54  ;;  %v282_v20 = vadd.f32 %v271_v18, %v262_v19 }
 0x141   : > { %585 = vrsqrt.f32 %v252_v53 }
 0x142   : > { %v253_v56 = vadd.f32 1e-05, %v249_v55 }
 0x143   : > { %v273_v16 = vpop.permute.xlu1 %272 }
 0x144   : > { %587 = vrsqrt.f32 %v253_v56  ;;  %v283_v28 = vadd.f32 %v273_v16, %v263_v24 }
 0x146   : > { %v582_v57 = vpop.eup %581 }
 0x147   : > { %v258_v58 = vmul.f32 %v582_v57, %v198_v41  ;;  %v275_v17 = vpop.permute.xlu1 %274 }
 0x148   : > { %v284_v29 = vadd.f32 %v275_v17, %v264_v27 }
 0x149   : > { %v286_v59 = vmul.f32 %v258_v58, %v714_v13 }
 0x14a   : > { %v584_v60 = vpop.eup %583 }
 0x14b   : > { %v586_v61 = vpop.eup %585  ;;  %294 = vrot.lane.b32.xlu0 %v286_v59, %s647_s26  ;;  %v259_v62 = vmul.f32 %v584_v60, %v199_v40  ;;  %v277_v22 = vpop.permute.xlu1 %276 }
 0x14c   : > { %v260_v63 = vmul.f32 %v586_v61, %v200_v42  ;;  %v285_v35 = vadd.f32 %v277_v22, %v265_v31 }
 0x14d   : > { %v287_v3 = vmul.f32 %v259_v62, %v726_v21 }
 0x14e   : > { %v588_v7 = vpop.eup %587  ;;  %v288_v10 = vmul.f32 %v260_v63, %v716_v15 }
 0x14f   : > { %296 = vrot.lane.b32.xlu1 %v287_v3, %s647_s26  ;;  %v261_v11 = vmul.f32 %v588_v7, %v201_v43 }
 0x150   : > { %298 = vrot.lane.b32.xlu0 %v288_v10, %s647_s26 }
 0x151   : > { %v289_v12 = vmul.f32 %v261_v11, %v728_v25 }
 0x153   : > { %300 = vrot.lane.b32.xlu1 %v289_v12, %s647_s26 }
 0x154   : > { %312 = vperm.xlu0 %577, %v258_v58  }
 0x157   : > { %317 = vperm.xlu1 %578, %v259_v62  }
 0x158   : > { %327 = vperm.xlu0 %577, %v261_v11  }
 0x15b   : > { %322 = vperm.xlu1 %578, %v260_v63  }
 0x15c   : > { %580 = vset.pattern.permute.xlu0 %v648_v14 }
 0x15f   : > { %579 = vset.pattern.permute.xlu1 %v648_v14 }
 0x1bd   : > { %v295_v23 = vpop.permute.xlu0 %294 }
 0x1be   : > { %v306_v26 = vsub.f32 %v282_v20, %v295_v23 }
 0x1c0   : > { %340 = vperm.xlu1 %579, %v306_v26  }
 0x1c1   : > { %v297_v30 = vpop.permute.xlu1 %296 }
 0x1c2   : > { %v307_v32 = vsub.f32 %v283_v28, %v297_v30  ;;  %v299_v33 = vpop.permute.xlu0 %298 }
 0x1c3   : > { %v308_v34 = vsub.f32 %v284_v29, %v299_v33 }
 0x1c4   : > { %345 = vperm.xlu0 %580, %v307_v32  }
 0x1c5   : > { %350 = vperm.xlu1 %579, %v308_v34   ;;  %v301_v13 = vpop.permute.xlu1 %300 }
 0x1c6   : > { %v309_v36 = vsub.f32 %v285_v35, %v301_v13 }
 0x1c9   : > { %355 = vperm.xlu1 %579, %v309_v36  }
 0x1d3   : > { %v313_v21 = vpop.permute.xlu0 %312 }
 0x1d4   : > { %v330_v15 = vmul.f32 %v313_v21, %v690_v0  ;;  %v331_v39 = vmul.f32 %v313_v21, %v692_v1 }
 0x1d6   : > { %v318_v37 = vpop.permute.xlu1 %317 }
 0x1d7   : > { %v328_v40 = vpop.permute.xlu0 %327  ;;  %v332_v43 = vmul.f32 %v318_v37, %v700_v5  ;;  %v333_v44 = vmul.f32 %v318_v37, %v702_v6 }
 0x1d8   : > { %v336_v55 = vmul.f32 %v328_v40, %v706_v8  ;;  %v337_v57 = vmul.f32 %v328_v40, %v708_v9 }
 0x1da   : > { %v323_v38 = vpop.permute.xlu1 %322 }
 0x1db   : > { %v334_v47 = vmul.f32 %v323_v38, %v694_v2  ;;  %v335_v48 = vmul.f32 %v323_v38, %v698_v4 }
 0x23f   : > { %v341_v41 = vpop.permute.xlu1 %340 }
 0x240   : > { %v358_v42 = vadd.f32 %v341_v41, %v330_v15  ;;  %v359_v25 = vadd.f32 %v341_v41, %v331_v39 }
 0x242   : > { %v537_v45 = vmul.f32 -1.442695, %v358_v42  ;;  %v538_v46 = vmul.f32 -1.442695, %v359_v25 }
 0x243   : > { %v346_v49 = vpop.permute.xlu0 %345 }
 0x244   : > { %589 = vpow2.f32 %v537_v45  ;;  %v351_v50 = vpop.permute.xlu1 %350  ;;  %v360_v51 = vadd.f32 %v346_v49, %v332_v43  ;;  %v361_v52 = vadd.f32 %v346_v49, %v333_v44 }
 0x245   : > { %591 = vpow2.f32 %v538_v46  ;;  %v362_v53 = vadd.f32 %v351_v50, %v334_v47  ;;  %v363_v54 = vadd.f32 %v351_v50, %v335_v48 }
 0x246   : > { %v539_v56 = vmul.f32 -1.442695, %v360_v51  ;;  %v540_v60 = vmul.f32 -1.442695, %v361_v52 }
 0x247   : > { %v541_v58 = vmul.f32 -1.442695, %v362_v53  ;;  %v542_v59 = vmul.f32 -1.442695, %v363_v54 }
 0x248   : > { %593 = vpow2.f32 %v539_v56  ;;  %v356_v61 = vpop.permute.xlu1 %355 }
 0x249   : > { %595 = vpow2.f32 %v541_v58  ;;  %v364_v62 = vadd.f32 %v356_v61, %v336_v55  ;;  %v365_v63 = vadd.f32 %v356_v61, %v337_v57 }
 0x24a   : > { %597 = vpow2.f32 %v542_v59 }
 0x24b   : > { %599 = vpow2.f32 %v540_v60  ;;  %v543_v3 = vmul.f32 -1.442695, %v364_v62  ;;  %v544_v7 = vmul.f32 -1.442695, %v365_v63 }
 0x24d   : > { %601 = vpow2.f32 %v543_v3 }
 0x24e   : > { %v590_v10 = vpop.eup %589  ;;  %603 = vpow2.f32 %v544_v7 }
 0x24f   : > { %v592_v11 = vpop.eup %591  ;;  %v390_v12 = vadd.f32 1.0, %v590_v10 }
 0x250   : > { %v391_v14 = vadd.f32 1.0, %v592_v11 }
 0x251   : > { %605 = vrcp.f32 %v390_v12 }
 0x252   : > { %v594_v16 = vpop.eup %593  ;;  %607 = vrcp.f32 %v391_v14 }
 0x253   : > { %v596_v17 = vpop.eup %595  ;;  %v392_v18 = vadd.f32 1.0, %v594_v16 }
 0x254   : > { %v598_v19 = vpop.eup %597  ;;  %v394_v20 = vadd.f32 1.0, %v596_v17 }
 0x255   : > { %v600_v22 = vpop.eup %599  ;;  %v395_v23 = vadd.f32 1.0, %v598_v19  ;;  %609 = vrcp.f32 %v392_v18 }
 0x256   : > { %611 = vrcp.f32 %v394_v20  ;;  %v393_v24 = vadd.f32 1.0, %v600_v22 }
 0x257   : > { %v602_v26 = vpop.eup %601  ;;  %613 = vrcp.f32 %v395_v23 }
 0x258   : > { %v604_v27 = vpop.eup %603  ;;  %615 = vrcp.f32 %v393_v24  ;;  %v396_v28 = vadd.f32 1.0, %v602_v26 }
 0x259   : > { %v397_v29 = vadd.f32 1.0, %v604_v27 }
 0x25a   : > { %617 = vrcp.f32 %v396_v28 }
 0x25b   : > { %v606_v30 = vpop.eup %605  ;;  %619 = vrcp.f32 %v397_v29 }
 0x25c   : > { %v608_v31 = vpop.eup %607  ;;  %v414_v32 = vmul.f32 %v606_v30, %v690_v0 }
 0x25d   : > { %v415_v33 = vmul.f32 %v608_v31, %v692_v1 }
 0x25e   : > { %422 = vst [vmem:[%s186_s29] sm:$0xff] %v414_v32 }
 0x25f   : > { %v610_v34 = vpop.eup %609  ;;  %423 = vst [vmem:[%s186_s29 + $0x8] sm:$0xff] %v415_v33 }
 0x260   : > { %v612_v35 = vpop.eup %611  ;;  %v416_v13 = vmul.f32 %v610_v34, %v700_v5 }
 0x261   : > { %v614_v36 = vpop.eup %613  ;;  %v418_v37 = vmul.f32 %v612_v35, %v694_v2 }
 0x262   : > { %v616_v21 = vpop.eup %615  ;;  %v419_v38 = vmul.f32 %v614_v36, %v698_v4  ;;  %424 = vst [vmem:[%s186_s29 + $0x20] sm:$0xff] %v416_v13 }
 0x263   : > { %426 = vst [vmem:[%s186_s29 + $0x10] sm:$0xff] %v418_v37  ;;  %v417_v15 = vmul.f32 %v616_v21, %v702_v6 }
 0x264   : > { %v618_v39 = vpop.eup %617  ;;  %427 = vst [vmem:[%s186_s29 + $0x18] sm:$0xff] %v419_v38 }
 0x265   : > { %v620_v0 = vpop.eup %619  ;;  %425 = vst [vmem:[%s186_s29 + $0x28] sm:$0xff] %v417_v15  ;;  %v420_v1 = vmul.f32 %v618_v39, %v706_v8 }
 0x266   : > { %v421_v40 = vmul.f32 %v620_v0, %v708_v9 }
 0x267   : > { %428 = vst [vmem:[%s186_s29 + $0x30] sm:$0xff] %v420_v1 }
 0x268   : > { %429 = vst [vmem:[%s186_s29 + $0x38] sm:$0xff] %v421_v40 }
 0x269 PF: > { %s12_s11 = sadd.s32 1, %s643_s11   ;;  %s791_s9 = smov %s639_s10 }
 0x26a   : > { %p9_p5 = scmp.ge.s32.totalorder %s12_s11, 4   ;;  %s792_s10 = smov %s794_s12 }
 0x26c   :  { %11 = sbr.rel (!%p9_p5) target bundleno = 2 (0x2), region = 59 }

</bundles_post_ra>
